<compile_context>
chip_gen: v5e
topology: v5e:2x2
jax: 0.10.0
libtpu: 0.0.40
codegen_flags: <defaults>
</compile_context>

<pallas_src>
import functools
import re

import jax
import jax.numpy as jnp
from jax import lax
from jax.experimental import pallas as pl
from jax.experimental.pallas import tpu as pltpu

KH = KW = 3      # kernel_size
PAD = 1          # padding=1 -> "same" output for stride 1
EPS = 1e-5       # nn.BatchNorm2d default eps

# Row indices inside the packed (8, HWp) multiplicative-mask tensor.
_M_NOT_LEFT, _M_NOT_RIGHT, _M_NOT_TOP, _M_NOT_BOTTOM, _M_VALID = 0, 1, 2, 3, 4


# --------------------------------------------------------------------------------------
# Hardware / tiling heuristics
# --------------------------------------------------------------------------------------
def _tpu_generation():
    """Best-effort TPU generation from device_kind ('TPU v5 lite' -> 5, 'TPU7x' -> 7)."""
    try:
        kind = jax.devices()[0].device_kind
    except Exception:
        return 0
    m = re.search(r"(\d+)", kind)
    return int(m.group(1)) if m else 0


def _vmem_limit(block_bytes, cap):
    # ~14x block working set (2x double-buffered in + out, ~8 f32 temporaries) + headroom.
    want = 14 * block_bytes + (4 << 20)
    return int(min(cap, max(32 << 20, want)))


def _plan(n, c, hw_pad, gen, force_two_pass):
    """Pick single-pass vs two-pass mode, channel/batch block sizes and the VMEM limit."""
    if gen >= 7 or gen == 0:            # v7x: only 64 MiB physical VMEM (or unknown chip)
        budget = (3 << 20) // 2         # ~1.5 MiB activation block
        vmem_cap = 40 << 20
    else:                               # v5e / v6e: 128 MiB VMEM -> bigger blocks amortize
        budget = 6 << 20                # per-step overhead and DMA descriptor count
        vmem_cap = 96 << 20

    # Channel block must be a multiple of 8 sublanes (f32 tiling) or the full channel count.
    cands = sorted({c} | {d for d in range(8, c, 8) if c % d == 0})
    min_cblk = min(cands)

    def fits_single(cb):                # conservative f32 sizing of the activation block
        return n * cb * hw_pad * 4 <= budget

    if not force_two_pass and fits_single(min_cblk):
        fitting = [d for d in cands if fits_single(d)]
        if c >= 16 and len(cands) > 1:
            # Force >= 2 channel grid steps so the "parallel" axis can shard over both
            # v7x TensorCores (divisors other than c are automatically <= c//2).
            fitting = [d for d in fitting if d < c] or fitting
        c_blk = max(fitting)
        block_bytes = n * c_blk * hw_pad * 4
        return dict(mode="single", c_blk=c_blk, n_blk=n,
                    vmem=_vmem_limit(block_bytes, vmem_cap))

    # Fallback: minimum legal channel block, batch tiled on a reduction-last grid axis.
    c_blk = min_cblk
    if force_two_pass:
        n_blk = 1
    else:
        divisors = [d for d in range(1, n + 1) if n % d == 0]
        fitting = [d for d in divisors if d * c_blk * hw_pad * 4 <= budget]
        n_blk = max(fitting) if fitting else 1
    block_bytes = n_blk * c_blk * hw_pad * 4
    return dict(mode="two_pass", c_blk=c_blk, n_blk=n_blk,
                vmem=_vmem_limit(block_bytes, vmem_cap))


# --------------------------------------------------------------------------------------
# Shared in-kernel pieces
# --------------------------------------------------------------------------------------
def _mask_row(m_ref, idx, dtype):
    hwp = m_ref.shape[1]
    return m_ref[idx:idx + 1, :].astype(dtype).reshape(1, 1, hwp)


def _conv3x3(x_ref, w_ref, m_ref, *, width, compute_dtype):
    """Depthwise 3x3 "same" conv as 9 shifted MACs.

    Shifts are lane rolls on the flattened H*W axis (XLU slot); the 1-pixel zero halo is
    handled with precomputed multiplicative edge masks.  Returns (NB, CB, HWp) in
    `compute_dtype`.
    """
    _, _, hwp = x_ref.shape
    x = x_ref[...].astype(compute_dtype)

    not_left = _mask_row(m_ref, _M_NOT_LEFT, compute_dtype)
    not_right = _mask_row(m_ref, _M_NOT_RIGHT, compute_dtype)
    not_top = _mask_row(m_ref, _M_NOT_TOP, compute_dtype)
    not_bot = _mask_row(m_ref, _M_NOT_BOTTOM, compute_dtype)

    x_lft = pltpu.roll(x, 1, axis=2) * not_left          # x[h, w-1]
    x_rgt = pltpu.roll(x, hwp - 1, axis=2) * not_right   # x[h, w+1]

    w = w_ref[...].astype(compute_dtype)                 # (CB, 9), row-major (kh, kw)

    def tap(k):                                          # per-channel tap weight (CB, 1)
        return w[:, k:k + 1]

    def row(kh):                                         # contribution of kernel row kh
        b = kh * KW
        return tap(b) * x_lft + tap(b + 1) * x + tap(b + 2) * x_rgt

    conv = pltpu.roll(row(0), width, axis=2) * not_top               # row h-1
    conv = conv + row(1)                                             # row h
    conv = conv + pltpu.roll(row(2), hwp - width, axis=2) * not_bot  # row h+1
    return conv


# --------------------------------------------------------------------------------------
# Single-pass kernel: full batch per channel block -> BN stats computed inline.
# --------------------------------------------------------------------------------------
def _dwconv_bn_kernel(x_ref, w_ref, g_ref, b_ref, m_ref, o_ref, *,
                      width, inv_count, padded, eps, compute_dtype):
    _, _, hwp = x_ref.shape
    conv = _conv3x3(x_ref, w_ref, m_ref, width=width,
                    compute_dtype=compute_dtype).astype(jnp.float32)

    # NOTE: the Conv2d bias is omitted on purpose: training-mode BatchNorm subtracts the
    # per-channel batch mean, so a per-channel constant cancels exactly.
    if padded:
        valid = _mask_row(m_ref, _M_VALID, jnp.float32)
        conv_v = conv * valid
    else:
        conv_v = conv
    mean = jnp.sum(conv_v, axis=(0, 2), keepdims=True) * inv_count          # (1, CB, 1)
    centered = conv - mean
    cv = centered * valid if padded else centered
    var = jnp.sum(cv * cv, axis=(0, 2), keepdims=True) * inv_count          # (1, CB, 1)
    scale = g_ref[...].astype(jnp.float32) * lax.rsqrt(var + eps)
    out = centered * scale + b_ref[...].astype(jnp.float32)
    o_ref[...] = out.astype(o_ref.dtype)


# --------------------------------------------------------------------------------------
# Two-pass fallback: pass 1 = conv + per-channel sum / sum-of-squares accumulated across
# batch tiles (reduction-last grid axis, pl.when init/finalize); pass 2 = BN affine.
# --------------------------------------------------------------------------------------
def _conv_stats_kernel(x_ref, w_ref, m_ref, conv_ref, sum_ref, ssq_ref, *,
                       width, padded, compute_dtype):
    _, _, hwp = x_ref.shape
    nb = pl.program_id(1)

    @pl.when(nb == 0)
    def _():
        sum_ref[...] = jnp.zeros_like(sum_ref)
        ssq_ref[...] = jnp.zeros_like(ssq_ref)

    conv = _conv3x3(x_ref, w_ref, m_ref, width=width, compute_dtype=compute_dtype)
    conv_ref[...] = conv.astype(conv_ref.dtype)

    conv32 = conv.astype(jnp.float32)
    if padded:
        conv32 = conv32 * _mask_row(m_ref, _M_VALID, jnp.float32)
    sum_ref[...] += jnp.sum(conv32, axis=(0, 2), keepdims=True)[0]          # (CB, 1)
    ssq_ref[...] += jnp.sum(conv32 * conv32, axis=(0, 2), keepdims=True)[0]


def _bn_apply_kernel(conv_ref, sum_ref, ssq_ref, g_ref, b_ref, o_ref, *, inv_count, eps):
    conv = conv_ref[...].astype(jnp.float32)                                # (NB, CB, HWp)
    mean = sum_ref[...] * inv_count                                         # (CB, 1)
    var = ssq_ref[...] * inv_count - mean * mean
    scale = g_ref[...].astype(jnp.float32) * lax.rsqrt(var + eps)
    shift = b_ref[...].astype(jnp.float32) - mean * scale
    o_ref[...] = (conv * scale + shift).astype(o_ref.dtype)


# --------------------------------------------------------------------------------------
# Wrapper
# --------------------------------------------------------------------------------------
def _build_masks(h, w, hw_pad, dtype):
    """Multiplicative edge masks packed as (8, hw_pad); rows 5..7 are unused filler."""
    hw = h * w
    pos = jnp.arange(hw_pad, dtype=jnp.int32)
    col = pos % w
    rows = [
        col != 0,              # not_left
        col != (w - 1),        # not_right
        pos >= w,              # not_top
        pos < (hw - w),        # not_bottom
        pos < hw,              # valid (real, non-padded positions)
    ]
    rows = rows + [jnp.ones_like(rows[0])] * (8 - len(rows))
    return jnp.stack(rows, axis=0).astype(dtype)


@functools.partial(jax.jit, static_argnames=("force_two_pass",))
def depthwise_conv2d_bn(x_nchw, w_dw, conv_bias, gamma, beta, *, force_two_pass=False):
    """Forward of DepthwiseConv2d: Conv2d(C, C, 3, padding=1, groups=C) + BatchNorm2d(C).

    x_nchw:  (N, C, H, W)   NCHW (PyTorch convention), f32 or bf16
    w_dw:    (C, 1, KH, KW) depthwise conv weight (PyTorch OIHW, I=1)
    conv_bias, gamma, beta: (C,)
    returns: (N, C, H, W) in x_nchw.dtype
    """
    del conv_bias   # cancels exactly under training-mode BatchNorm (see kernel note)
    n, c, h, w = x_nchw.shape
    hw = h * w
    hw_pad = ((hw + 127) // 128) * 128     # lane-dense last dim (multiple of 128)
    padded = hw_pad != hw

    gen = _tpu_generation()
    in_dtype = x_nchw.dtype
    # bf16 MACs only on chips with a bf16 VPU (v6e / v7x); v5e upcasts to f32 in-kernel.
    if in_dtype == jnp.bfloat16 and gen >= 6:
        compute_dtype = jnp.bfloat16
    else:
        compute_dtype = jnp.float32

    x3 = x_nchw.reshape(n, c, hw)                             # free dim-merge reshape
    if padded:
        x3 = jnp.pad(x3, ((0, 0), (0, 0), (0, hw_pad - hw)))  # one HBM pass, only if ragged
    w9 = w_dw.reshape(c, KH * KW).astype(compute_dtype)       # (C, 9)
    g2 = gamma.reshape(c, 1).astype(jnp.float32)
    b2 = beta.reshape(c, 1).astype(jnp.float32)
    masks = _build_masks(h, w, hw_pad, compute_dtype)         # (8, hw_pad), fetched once

    plan = _plan(n, c, hw_pad, gen, force_two_pass)
    c_blk = plan["c_blk"]
    gc = c // c_blk
    inv_count = 1.0 / (n * hw)                                # BN divisor: N*H*W (real)

    if plan["mode"] == "single":
        kernel = functools.partial(
            _dwconv_bn_kernel, width=w, inv_count=inv_count, padded=padded,
            eps=EPS, compute_dtype=compute_dtype)
        out3 = pl.pallas_call(
            kernel,
            out_shape=jax.ShapeDtypeStruct((n, c, hw_pad), in_dtype),
            grid=(gc,),
            in_specs=[
                pl.BlockSpec((n, c_blk, hw_pad), lambda i: (0, i, 0)),
                pl.BlockSpec((c_blk, KH * KW), lambda i: (i, 0)),
                pl.BlockSpec((c_blk, 1), lambda i: (i, 0)),
                pl.BlockSpec((c_blk, 1), lambda i: (i, 0)),
                pl.BlockSpec((8, hw_pad), lambda i: (0, 0)),
            ],
            out_specs=pl.BlockSpec((n, c_blk, hw_pad), lambda i: (0, i, 0)),
            compiler_params=pltpu.CompilerParams(
                dimension_semantics=("parallel",),
                vmem_limit_bytes=plan["vmem"]),
        )(x3, w9, g2, b2, masks)
    else:
        n_blk = plan["n_blk"]
        gn = n // n_blk
        conv_dtype = jnp.float32 if in_dtype == jnp.float32 else in_dtype

        p1 = functools.partial(_conv_stats_kernel, width=w, padded=padded,
                               compute_dtype=compute_dtype)
        conv3, s1, s2 = pl.pallas_call(
            p1,
            out_shape=(
                jax.ShapeDtypeStruct((n, c, hw_pad), conv_dtype),
                jax.ShapeDtypeStruct((c, 1), jnp.float32),
                jax.ShapeDtypeStruct((c, 1), jnp.float32),
            ),
            grid=(gc, gn),
            in_specs=[
                pl.BlockSpec((n_blk, c_blk, hw_pad), lambda i, j: (j, i, 0)),
                pl.BlockSpec((c_blk, KH * KW), lambda i, j: (i, 0)),
                pl.BlockSpec((8, hw_pad), lambda i, j: (0, 0)),
            ],
            out_specs=(
                pl.BlockSpec((n_blk, c_blk, hw_pad), lambda i, j: (j, i, 0)),
                pl.BlockSpec((c_blk, 1), lambda i, j: (i, 0)),   # resident across batch axis
                pl.BlockSpec((c_blk, 1), lambda i, j: (i, 0)),
            ),
            compiler_params=pltpu.CompilerParams(
                dimension_semantics=("parallel", "arbitrary"),
                vmem_limit_bytes=plan["vmem"]),
        )(x3, w9, masks)

        p2 = functools.partial(_bn_apply_kernel, inv_count=inv_count, eps=EPS)
        out3 = pl.pallas_call(
            p2,
            out_shape=jax.ShapeDtypeStruct((n, c, hw_pad), in_dtype),
            grid=(gc, gn),
            in_specs=[
                pl.BlockSpec((n_blk, c_blk, hw_pad), lambda i, j: (j, i, 0)),
                pl.BlockSpec((c_blk, 1), lambda i, j: (i, 0)),
                pl.BlockSpec((c_blk, 1), lambda i, j: (i, 0)),
                pl.BlockSpec((c_blk, 1), lambda i, j: (i, 0)),
                pl.BlockSpec((c_blk, 1), lambda i, j: (i, 0)),
            ],
            out_specs=pl.BlockSpec((n_blk, c_blk, hw_pad), lambda i, j: (j, i, 0)),
            compiler_params=pltpu.CompilerParams(
                dimension_semantics=("parallel", "parallel"),
                vmem_limit_bytes=plan["vmem"]),
        )(conv3, s1, s2, g2, b2)

    if padded:
        out3 = out3[:, :, :hw]
    return out3.reshape(n, c, h, w)


# --------------------------------------------------------------------------------------
# Reference + self-test
# --------------------------------------------------------------------------------------
def _reference(x_nchw, w_dw, conv_bias, gamma, beta):
    """Pure-JAX (f32) reference: depthwise conv (with bias) + training-mode BatchNorm."""
    N, C, H, W = x_nchw.shape
    conv = lax.conv_general_dilated(
        x_nchw.astype(jnp.float32), w_dw.astype(jnp.float32),
        window_strides=(1, 1), padding=((PAD, PAD), (PAD, PAD)),
        dimension_numbers=("NCHW", "OIHW", "NCHW"), feature_group_count=C)
    conv = conv + conv_bias.reshape(1, C, 1, 1)
    mean = jnp.mean(conv, axis=(0, 2, 3), keepdims=True)
    var = jnp.mean((conv - mean) ** 2, axis=(0, 2, 3), keepdims=True)
    return (conv - mean) / jnp.sqrt(var + EPS) * gamma.reshape(1, C, 1, 1) \
           + beta.reshape(1, C, 1, 1)


if __name__ == "__main__":
    # Depthwise => output_channels == input_channels (groups=C).
    N, C, H, W = 2, 16, 16, 16

    key = jax.random.PRNGKey(0)
    kx, kw_, kb, kg, kbe = jax.random.split(key, 5)
    x = jax.random.normal(kx, (N, C, H, W), dtype=jnp.float32)
    w_dw = 0.1 * jax.random.normal(kw_, (C, 1, KH, KW), dtype=jnp.float32)
    conv_bias = 0.05 * jax.random.normal(kb, (C,), dtype=jnp.float32)
    gamma = 1.0 + 0.1 * jax.random.normal(kg, (C,), dtype=jnp.float32)
    beta = 0.1 * jax.random.normal(kbe, (C,), dtype=jnp.float32)

    # 1) Fast single-pass path (hw=256 is lane-dense, C=16 -> 2 channel grid steps).
    out = jax.block_until_ready(depthwise_conv2d_bn(x, w_dw, conv_bias, gamma, beta))
    ref = _reference(x, w_dw, conv_bias, gamma, beta)
    assert out.shape == (N, C, H, W)
    err = float(jnp.max(jnp.abs(out - ref)))
    assert jnp.allclose(out, ref, atol=1e-4, rtol=1e-4), f"single-pass max abs err = {err}"

    # 2) Two-pass fallback (cross-batch-tile BN stats), forced at small shape.
    out2 = jax.block_until_ready(
        depthwise_conv2d_bn(x, w_dw, conv_bias, gamma, beta, force_two_pass=True))
    err2 = float(jnp.max(jnp.abs(out2 - ref)))
    assert jnp.allclose(out2, ref, atol=1e-4, rtol=1e-4), f"two-pass max abs err = {err2}"

    # 3) Non-lane-dense spatial size: hw=225 -> padded to 256 in HBM, BN masks the tail.
    Ho = Wo = 15
    xo = jax.random.normal(kx, (N, C, Ho, Wo), dtype=jnp.float32)
    out3 = jax.block_until_ready(depthwise_conv2d_bn(xo, w_dw, conv_bias, gamma, beta))
    ref3 = _reference(xo, w_dw, conv_bias, gamma, beta)
    err3 = float(jnp.max(jnp.abs(out3 - ref3)))
    assert out3.shape == (N, C, Ho, Wo)
    assert jnp.allclose(out3, ref3, atol=1e-4, rtol=1e-4), f"padded-hw max abs err = {err3}"

    # 4) bf16 I/O (bf16 MACs on v6e/v7x, f32 MACs on v5e); loose tolerance for bf16.
    xb = x.astype(jnp.bfloat16)
    wb = w_dw.astype(jnp.bfloat16)
    outb = jax.block_until_ready(depthwise_conv2d_bn(xb, wb, conv_bias, gamma, beta))
    refb = _reference(xb, wb, conv_bias, gamma, beta)
    errb = float(jnp.max(jnp.abs(outb.astype(jnp.float32) - refb)))
    assert outb.dtype == jnp.bfloat16
    assert jnp.allclose(outb.astype(jnp.float32), refb, atol=1e-1, rtol=1e-1), \
        f"bf16 max abs err = {errb}"

    print("KERNEL_OK")
</pallas_src>

<mosaic_0001>
module attributes {stable_mosaic.version = 11 : i64} {
  func.func @_dwconv_bn_kernel(%arg0: i32, %arg1: memref<2x8x256xf32, #tpu.memory_space<vmem>>, %arg2: memref<8x9xf32, #tpu.memory_space<vmem>>, %arg3: memref<8x1xf32, #tpu.memory_space<vmem>>, %arg4: memref<8x1xf32, #tpu.memory_space<vmem>>, %arg5: memref<8x256xf32, #tpu.memory_space<vmem>>, %arg6: memref<2x8x256xf32, #tpu.memory_space<vmem>>) attributes {dimension_semantics = [#tpu.dimension_semantics<parallel>], iteration_bounds = array<i64: 2>, scalar_prefetch = 0 : i64, scratch_operands = 0 : i64, tpu.core_type = #tpu.core_type<tc>, window_params = [{transform_indices = @transform_0, window_bounds = array<i64: 2, 8, 256>}, {transform_indices = @transform_1, window_bounds = array<i64: 8, 9>}, {transform_indices = @transform_2, window_bounds = array<i64: 8, 1>}, {transform_indices = @transform_3, window_bounds = array<i64: 8, 1>}, {pipeline_mode = #tpu.pipeline_mode<synchronous>, transform_indices = @transform_4, window_bounds = array<i64: 8, 256>}, {transform_indices = @transform_5, window_bounds = array<i64: 2, 8, 256>}]} {
    %c0 = arith.constant 0 : index
    %c0_0 = arith.constant 0 : index
    %c0_1 = arith.constant 0 : index
    %0 = vector.load %arg1[%c0, %c0_0, %c0_1] : memref<2x8x256xf32, #tpu.memory_space<vmem>>, vector<2x8x256xf32>
    %c0_2 = arith.constant 0 : index
    %c0_3 = arith.constant 0 : index
    %1 = vector.load %arg5[%c0_2, %c0_3] : memref<8x256xf32, #tpu.memory_space<vmem>>, vector<1x256xf32>
    %2 = vector.shape_cast %1 : vector<1x256xf32> to vector<1x1x256xf32>
    %c1 = arith.constant 1 : index
    %c0_4 = arith.constant 0 : index
    %3 = vector.load %arg5[%c1, %c0_4] : memref<8x256xf32, #tpu.memory_space<vmem>>, vector<1x256xf32>
    %4 = vector.shape_cast %3 : vector<1x256xf32> to vector<1x1x256xf32>
    %c2 = arith.constant 2 : index
    %c0_5 = arith.constant 0 : index
    %5 = vector.load %arg5[%c2, %c0_5] : memref<8x256xf32, #tpu.memory_space<vmem>>, vector<1x256xf32>
    %6 = vector.shape_cast %5 : vector<1x256xf32> to vector<1x1x256xf32>
    %c3 = arith.constant 3 : index
    %c0_6 = arith.constant 0 : index
    %7 = vector.load %arg5[%c3, %c0_6] : memref<8x256xf32, #tpu.memory_space<vmem>>, vector<1x256xf32>
    %8 = vector.shape_cast %7 : vector<1x256xf32> to vector<1x1x256xf32>
    %c1_i32 = arith.constant 1 : i32
    %9 = tpu.dynamic_rotate %0 by %c1_i32 dim 2 : vector<2x8x256xf32>, i32 -> vector<2x8x256xf32>
    %10 = vector.broadcast %2 : vector<1x1x256xf32> to vector<2x8x256xf32>
    %11 = arith.mulf %9, %10 : vector<2x8x256xf32>
    %c255_i32 = arith.constant 255 : i32
    %12 = tpu.dynamic_rotate %0 by %c255_i32 dim 2 : vector<2x8x256xf32>, i32 -> vector<2x8x256xf32>
    %13 = vector.broadcast %4 : vector<1x1x256xf32> to vector<2x8x256xf32>
    %14 = arith.mulf %12, %13 : vector<2x8x256xf32>
    %c0_7 = arith.constant 0 : index
    %c0_8 = arith.constant 0 : index
    %15 = vector.load %arg2[%c0_7, %c0_8] : memref<8x9xf32, #tpu.memory_space<vmem>>, vector<8x9xf32>
    %16 = vector.extract_strided_slice %15 {offsets = [0, 0], sizes = [8, 1], strides = [1, 1]} : vector<8x9xf32> to vector<8x1xf32>
    %17 = vector.shape_cast %16 : vector<8x1xf32> to vector<1x8x1xf32>
    %18 = vector.broadcast %17 : vector<1x8x1xf32> to vector<2x8x256xf32>
    %19 = arith.mulf %18, %11 : vector<2x8x256xf32>
    %20 = vector.extract_strided_slice %15 {offsets = [0, 1], sizes = [8, 1], strides = [1, 1]} : vector<8x9xf32> to vector<8x1xf32>
    %21 = vector.shape_cast %20 : vector<8x1xf32> to vector<1x8x1xf32>
    %22 = vector.broadcast %21 : vector<1x8x1xf32> to vector<2x8x256xf32>
    %23 = arith.mulf %22, %0 : vector<2x8x256xf32>
    %24 = arith.addf %19, %23 : vector<2x8x256xf32>
    %25 = vector.extract_strided_slice %15 {offsets = [0, 2], sizes = [8, 1], strides = [1, 1]} : vector<8x9xf32> to vector<8x1xf32>
    %26 = vector.shape_cast %25 : vector<8x1xf32> to vector<1x8x1xf32>
    %27 = vector.broadcast %26 : vector<1x8x1xf32> to vector<2x8x256xf32>
    %28 = arith.mulf %27, %14 : vector<2x8x256xf32>
    %29 = arith.addf %24, %28 : vector<2x8x256xf32>
    %c16_i32 = arith.constant 16 : i32
    %30 = tpu.dynamic_rotate %29 by %c16_i32 dim 2 : vector<2x8x256xf32>, i32 -> vector<2x8x256xf32>
    %31 = vector.broadcast %6 : vector<1x1x256xf32> to vector<2x8x256xf32>
    %32 = arith.mulf %30, %31 : vector<2x8x256xf32>
    %33 = vector.extract_strided_slice %15 {offsets = [0, 3], sizes = [8, 1], strides = [1, 1]} : vector<8x9xf32> to vector<8x1xf32>
    %34 = vector.shape_cast %33 : vector<8x1xf32> to vector<1x8x1xf32>
    %35 = vector.broadcast %34 : vector<1x8x1xf32> to vector<2x8x256xf32>
    %36 = arith.mulf %35, %11 : vector<2x8x256xf32>
    %37 = vector.extract_strided_slice %15 {offsets = [0, 4], sizes = [8, 1], strides = [1, 1]} : vector<8x9xf32> to vector<8x1xf32>
    %38 = vector.shape_cast %37 : vector<8x1xf32> to vector<1x8x1xf32>
    %39 = vector.broadcast %38 : vector<1x8x1xf32> to vector<2x8x256xf32>
    %40 = arith.mulf %39, %0 : vector<2x8x256xf32>
    %41 = arith.addf %36, %40 : vector<2x8x256xf32>
    %42 = vector.extract_strided_slice %15 {offsets = [0, 5], sizes = [8, 1], strides = [1, 1]} : vector<8x9xf32> to vector<8x1xf32>
    %43 = vector.shape_cast %42 : vector<8x1xf32> to vector<1x8x1xf32>
    %44 = vector.broadcast %43 : vector<1x8x1xf32> to vector<2x8x256xf32>
    %45 = arith.mulf %44, %14 : vector<2x8x256xf32>
    %46 = arith.addf %41, %45 : vector<2x8x256xf32>
    %47 = arith.addf %32, %46 : vector<2x8x256xf32>
    %48 = vector.extract_strided_slice %15 {offsets = [0, 6], sizes = [8, 1], strides = [1, 1]} : vector<8x9xf32> to vector<8x1xf32>
    %49 = vector.shape_cast %48 : vector<8x1xf32> to vector<1x8x1xf32>
    %50 = vector.broadcast %49 : vector<1x8x1xf32> to vector<2x8x256xf32>
    %51 = arith.mulf %50, %11 : vector<2x8x256xf32>
    %52 = vector.extract_strided_slice %15 {offsets = [0, 7], sizes = [8, 1], strides = [1, 1]} : vector<8x9xf32> to vector<8x1xf32>
    %53 = vector.shape_cast %52 : vector<8x1xf32> to vector<1x8x1xf32>
    %54 = vector.broadcast %53 : vector<1x8x1xf32> to vector<2x8x256xf32>
    %55 = arith.mulf %54, %0 : vector<2x8x256xf32>
    %56 = arith.addf %51, %55 : vector<2x8x256xf32>
    %57 = vector.extract_strided_slice %15 {offsets = [0, 8], sizes = [8, 1], strides = [1, 1]} : vector<8x9xf32> to vector<8x1xf32>
    %58 = vector.shape_cast %57 : vector<8x1xf32> to vector<1x8x1xf32>
    %59 = vector.broadcast %58 : vector<1x8x1xf32> to vector<2x8x256xf32>
    %60 = arith.mulf %59, %14 : vector<2x8x256xf32>
    %61 = arith.addf %56, %60 : vector<2x8x256xf32>
    %c240_i32 = arith.constant 240 : i32
    %62 = tpu.dynamic_rotate %61 by %c240_i32 dim 2 : vector<2x8x256xf32>, i32 -> vector<2x8x256xf32>
    %63 = vector.broadcast %8 : vector<1x1x256xf32> to vector<2x8x256xf32>
    %64 = arith.mulf %62, %63 : vector<2x8x256xf32>
    %65 = arith.addf %47, %64 : vector<2x8x256xf32>
    %cst = arith.constant dense<0.000000e+00> : vector<8xf32>
    %66 = vector.multi_reduction <add>, %65, %cst [0, 2] : vector<2x8x256xf32> to vector<8xf32>
    %67 = vector.shape_cast %66 : vector<8xf32> to vector<1x8x1xf32>
    %cst_9 = arith.constant 0.001953125 : f32
    %68 = vector.broadcast %cst_9 : f32 to vector<1x8x1xf32>
    %69 = arith.mulf %67, %68 : vector<1x8x1xf32>
    %70 = vector.broadcast %69 : vector<1x8x1xf32> to vector<2x8x256xf32>
    %71 = arith.subf %65, %70 : vector<2x8x256xf32>
    %72 = arith.mulf %71, %71 : vector<2x8x256xf32>
    %cst_10 = arith.constant dense<0.000000e+00> : vector<8xf32>
    %73 = vector.multi_reduction <add>, %72, %cst_10 [0, 2] : vector<2x8x256xf32> to vector<8xf32>
    %74 = vector.shape_cast %73 : vector<8xf32> to vector<1x8x1xf32>
    %cst_11 = arith.constant 0.001953125 : f32
    %75 = vector.broadcast %cst_11 : f32 to vector<1x8x1xf32>
    %76 = arith.mulf %74, %75 : vector<1x8x1xf32>
    %c0_12 = arith.constant 0 : index
    %c0_13 = arith.constant 0 : index
    %77 = vector.load %arg3[%c0_12, %c0_13] : memref<8x1xf32, #tpu.memory_space<vmem>>, vector<8x1xf32>
    %cst_14 = arith.constant 9.99999974E-6 : f32
    %78 = vector.broadcast %cst_14 : f32 to vector<1x8x1xf32>
    %79 = arith.addf %76, %78 : vector<1x8x1xf32>
    %80 = math.rsqrt %79 : vector<1x8x1xf32>
    %81 = vector.shape_cast %77 : vector<8x1xf32> to vector<1x8x1xf32>
    %82 = arith.mulf %81, %80 : vector<1x8x1xf32>
    %83 = vector.broadcast %82 : vector<1x8x1xf32> to vector<2x8x256xf32>
    %84 = arith.mulf %71, %83 : vector<2x8x256xf32>
    %c0_15 = arith.constant 0 : index
    %c0_16 = arith.constant 0 : index
    %85 = vector.load %arg4[%c0_15, %c0_16] : memref<8x1xf32, #tpu.memory_space<vmem>>, vector<8x1xf32>
    %86 = vector.shape_cast %85 : vector<8x1xf32> to vector<1x8x1xf32>
    %87 = vector.broadcast %86 : vector<1x8x1xf32> to vector<2x8x256xf32>
    %88 = arith.addf %84, %87 : vector<2x8x256xf32>
    %c0_17 = arith.constant 0 : index
    %c0_18 = arith.constant 0 : index
    %c0_19 = arith.constant 0 : index
    %89 = vector.load %arg6[%c0_17, %c0_18, %c0_19] : memref<2x8x256xf32, #tpu.memory_space<vmem>>, vector<2x8x256xf32>
    tpu.vector_store %arg6[%c0_17, %c0_18, %c0_19], %88 {strides = array<i32>} : memref<2x8x256xf32, #tpu.memory_space<vmem>>, vector<2x8x256xf32>,
    return
  }
  func.func @transform_0(%arg0: i32) -> (i32, i32, i32) {
    %c0_i32 = arith.constant 0 : i32
    %c0_i32_0 = arith.constant 0 : i32
    %c0_i32_1 = arith.constant 0 : i32
    return %c0_i32, %arg0, %c0_i32_0 : i32, i32, i32
  }
  func.func @transform_1(%arg0: i32) -> (i32, i32) {
    %c0_i32 = arith.constant 0 : i32
    %c0_i32_0 = arith.constant 0 : i32
    return %arg0, %c0_i32 : i32, i32
  }
  func.func @transform_2(%arg0: i32) -> (i32, i32) {
    %c0_i32 = arith.constant 0 : i32
    %c0_i32_0 = arith.constant 0 : i32
    return %arg0, %c0_i32 : i32, i32
  }
  func.func @transform_3(%arg0: i32) -> (i32, i32) {
    %c0_i32 = arith.constant 0 : i32
    %c0_i32_0 = arith.constant 0 : i32
    return %arg0, %c0_i32 : i32, i32
  }
  func.func @transform_4(%arg0: i32) -> (i32, i32) {
    %c0_i32 = arith.constant 0 : i32
    %c0_i32_0 = arith.constant 0 : i32
    %c0_i32_1 = arith.constant 0 : i32
    return %c0_i32, %c0_i32_0 : i32, i32
  }
  func.func @transform_5(%arg0: i32) -> (i32, i32, i32) {
    %c0_i32 = arith.constant 0 : i32
    %c0_i32_0 = arith.constant 0 : i32
    %c0_i32_1 = arith.constant 0 : i32
    return %c0_i32, %arg0, %c0_i32_0 : i32, i32, i32
  }
}

</mosaic_0001>

<bundles_post_ra>
// kernel: depthwise_conv2d_bn.1
= control target key start
LH: loop header
LB: loop body
LE: loop exit
PB: predicated region body
PF: predicated region fallthrough
CT: control target
= control target key end

     0   :  { %s823_s18 = smov 0   ;;  %s825_s19 = smov 0   ;;  %s1001_s0 = inlined_call_operand.vmem [shape: f32[2,16,256], index: 0, kind: input, shape index: {}]   ;;  %s1002_s1 = inlined_call_operand.vmem [shape: f32[16,9], index: 1, kind: input, shape index: {}]   ;;  %s1003_s2 = inlined_call_operand.vmem [shape: f32[16,1], index: 2, kind: input, shape index: {}]   ;;  %s1004_s3 = inlined_call_operand.vmem [shape: f32[16,1], index: 3, kind: input, shape index: {}]   ;;  %s1005_s4 = inlined_call_operand.vmem [shape: f32[8,256], index: 4, kind: input, shape index: {}]   ;;  %s1006_s5 = inlined_call_operand.vmem [shape: f32[2,16,256], index: 5, kind: output, shape index: {}]  }
   0x1   :  { %s827_s20 = smov 0  }
   0x2 LB: > { %s839_s21 = sadd.s32 4294967295, %s778_s20   ;;  %s842_s22 = sadd.s32 1, %s778_s20   ;;  %s778_s20 = sphi %s827_s20, %s1010_s20   ;;  %s774_s19 = sphi %s825_s19, %s1009_s19   ;;  %s770_s18 = sphi %s823_s18, %s1008_s18  }
   0x3   : > { %s19_s23 = ssub.s32 %s778_s20, %s842_s22  ;;  %s22_s24 = sadd.s32 1, %s774_s19 }
   0x4   : > { %p20_p0 = scmp.eq.s32.totalorder %s19_s23, 0  ;;  %p29_p1 = scmp.ne.s32.totalorder %s774_s19, %s770_s18 }
   0x5   : > { %p30_p2 = scmp.eq.s32.totalorder %s778_s20, 0  ;;  %p158_p3 = scmp.eq.s32.totalorder %s839_s21, 1 }
   0x6   : > { %s852_s25 = scalar_select %p20_p0, %s774_s19, %s22_s24  }
   0x7   : > { %p31_p4 = por %p30_p2, %p29_p1  ;;  %p854_p5 = por %p158_p3, %p29_p1 }
   0x8   : > { %p687_p6 = scmp.ge.s32.totalorder %s778_s20, 2 }
   0xa   : > { %183 = sbr.rel (%p687_p6) target bundleno = 23 (0x17), region = 20 }
   0xf   : > { %186 = sbr.rel (!%p31_p4) target bundleno = 23 (0x17), region = 24  ;;  %s188_s27 = sand.u32 (%p31_p4), 1, %s774_s19  }
  0x10   : > { %s705_s28 = sshll.u32 (%p31_p4), %s778_s20, 4  ;;  %s688_s29 = sshll.u32 (%p31_p4), %s188_s27, 5 }
  0x11   : > { %s193_s7 = scalar_lea.vmem (%p31_p4), %s1001_s0, %s705_s28  ;;  %s190_s8 = scalar_lea.vmem (%p31_p4), [#allocation2], %s688_s29 }
  0x12   : > { %v206_v0 = vld [vmem:[%s193_s7] sm:$0xff] (%p31_p4)  ;;  %v208_v1 = vld [vmem:[%s193_s7 + $0x8] sm:$0xff] (%p31_p4) }
  0x13   : > { %v210_v2 = vld [vmem:[%s193_s7 + $0x20] sm:$0xff] (%p31_p4)  ;;  %207 = vst [vmem:[%s190_s8] sm:$0xff] (%p31_p4), %v206_v0  ;;  %v212_v3 = vld [vmem:[%s193_s7 + $0x28] sm:$0xff] (%p31_p4) }
  0x14   : > { %209 = vst [vmem:[%s190_s8 + $0x8] sm:$0xff] %v208_v1 }
  0x15   : > { %211 = vst [vmem:[%s190_s8 + $0x10] sm:$0xff] %v210_v2 }
  0x16   : > { %213 = vst [vmem:[%s190_s8 + $0x18] sm:$0xff] %v212_v3 }
  0x17 PF: > { %p691_p7 = scmp.ge.s32.totalorder %s778_s20, 1  ;;  %p239_p8 = scmp.lt.s32.totalorder %s778_s20, 3 }
  0x19   : > { %p240_p9 = pnand %p691_p7, %p239_p8 }
  0x1a   : > { %s246_s9 = sand.u32 (!%p240_p9), 1, %s770_s18   ;;  %p284_p10 = scmp.lt.s32.totalorder (!%p240_p9), %s839_s21, 1 }
  0x1b   : > { %243 = sbr.rel (%p240_p9) target bundleno = 724 (0x2d4), region = 59  ;;  %s867_s10 = sshll.u32 (!%p240_p9), %s246_s9, 5 }
  0x1c   : > { %s248_s11 = scalar_lea.vmem (!%p240_p9), [#allocation2], %s867_s10  ;;  %s783_s12 = smov (!%p240_p9), 1  }
  0x1d   : > { %s784_s13 = smov (!%p240_p9), 127   ;;  %s791_s28 = smov (!%p240_p9), 16  }
  0x1e   : > { %s792_s29 = smov (!%p240_p9), 112   ;;  %s283_s17 = scalar_lea.vmem (!%p240_p9), [#allocation3], %s867_s10 }
  0x20   : > { %v780_v4 = vmov 1   ;;  %v781_v5 = vmov 0   ;;  %v782_v6 = vmov 2   ;;  %v870_v7 = vld [vmem:[%s248_s11 + $0x10] sm:$0xff]  ;;  %v872_v8 = vld [vmem:[%s248_s11] sm:$0xff]  ;;  %s285_s14 = scalar_select %p284_p10, %s839_s21, 1  ;;  %v315_v22 = vlaneseq }
  0x21   : > { %745 = vset.pattern.permute.xlu1 %v780_v4  ;;  %744 = vset.pattern.permute.xlu0 %v781_v5  ;;  %v879_v9 = vld [vmem:[%s248_s11 + $0x18] sm:$0xff]  ;;  %v881_v10 = vld [vmem:[%s248_s11 + $0x8] sm:$0xff]  ;;  %v785_v12 = vmov 6   ;;  %v786_v13 = vmov 7   ;;  %v787_v14 = vmov 8   ;;  %v788_v15 = vmov 5  }
  0x22   : > { %746 = vset.pattern.permute.xlu2 %v782_v6  ;;  %309 = vrot.lane.b32.xlu1 %v870_v7, %s783_s12  ;;  %s883_s15 = sshll.u32 %s285_s14, 3  ;;  %v789_v16 = vmov 3   ;;  %v790_v17 = vmov 4   ;;  %v894_v23 = vand.u32 127, %v315_v22 }
  0x23   : > { %331 = vrot.lane.b32.xlu2 %v872_v8, %s784_s13  ;;  %307 = vrot.lane.b32.xlu0 %v872_v8, %s783_s12  ;;  %s287_s18 = scalar_lea.vmem %s1002_s1, %s883_s15  ;;  %v697_v26 = vld [vmem:[%s1005_s4 + $0x1] ss:$8 sm:$0x3]  ;;  %v300_v27 = vld [vmem:[%s1005_s4] ss:$8 sm:$0x3]  ;;  %s295_s16 = scalar_lea.vmem %s1004_s3, %s883_s15 }
  0x24   : > { %v353_v11 = vld [vmem:[%s287_s18] sm:$0xff]  ;;  %vm339_vm0 = vcmp.lt.s32.totalorder %v894_v23, 127  ;;  %vm317_vm1 = vcmp.lt.s32.totalorder %v894_v23, 1  ;;  %v345_v29 = vperm.slane %v697_v26, 0  ;;  %v346_v30 = vperm.slane %v697_v26, 1 }
  0x25   : > { %v323_v31 = vperm.slane %v300_v27, 0  ;;  %v324_v32 = vperm.slane %v300_v27, 1  ;;  %vm395_vm2 = vcmp.lt.s32.totalorder %v894_v23, 16  ;;  %vm485_vm3 = vcmp.lt.s32.totalorder %v894_v23, 112 }
  0x2a   : > { %313 = vrot.lane.b32.xlu1 %v879_v9, %s783_s12 }
  0x2b   : > { %335 = vrot.lane.b32.xlu2 %v881_v10, %s784_s13  ;;  %311 = vrot.lane.b32.xlu0 %v881_v10, %s783_s12  ;;  %s291_s12 = scalar_lea.vmem %s1003_s2, %s883_s15  ;;  %s706_s15 = sshll.u32 (%p854_p5), %s839_s21, 4 }
  0x2c   : > { %s568_s23 = scalar_lea.vmem (%p854_p5), %s1006_s5, %s706_s15 }
  0x32   : > { %364 = vperm.xlu1 %745, %v353_v11  }
  0x33   : > { %333 = vrot.lane.b32.xlu2 %v870_v7, %s784_s13  ;;  %356 = vperm.xlu0 %744, %v353_v11  }
  0x3a   : > { %337 = vrot.lane.b32.xlu1 %v879_v9, %s784_s13 }
  0x3b   : > { %376 = vperm.xlu2 %746, %v353_v11   ;;  %747 = vset.pattern.permute.xlu0 %v785_v12 }
  0x3c   : > { %748 = vset.pattern.permute.xlu1 %v786_v13  ;;  %446 = vperm.xlu0 %747, %v353_v11  }
  0x42   : > { %454 = vperm.xlu1 %748, %v353_v11  }
  0x43   : > { %749 = vset.pattern.permute.xlu2 %v787_v14 }
  0x44   : > { %466 = vperm.xlu2 %749, %v353_v11   ;;  %752 = vset.pattern.permute.xlu0 %v788_v15 }
  0x45   : > { %430 = vperm.xlu0 %752, %v353_v11  }
  0x4a   : > { %750 = vset.pattern.permute.xlu1 %v789_v16 }
  0x4b   : > { %410 = vperm.xlu1 %750, %v353_v11  }
  0x4c   : > { %751 = vset.pattern.permute.xlu2 %v790_v17 }
  0x4d   : > { %418 = vperm.xlu2 %751, %v353_v11   ;;  %753 = vset.pattern.permute.xlu0 %v781_v5 }
  0x7d   : > { %v332_v18 = vpop.permute.xlu2 %331 }
  0x85   : > { %v336_v19 = vpop.permute.xlu2 %335 }
  0x86   : > { %v340_v33 = vsel %vm339_vm0, %v332_v18, %v336_v19  ;;  %v342_v34 = vsel %vm339_vm0, %v336_v19, %v332_v18 }
  0x87   : > { %v912_v37 = vmul.f32 %v345_v29, %v340_v33  ;;  %v914_v38 = vmul.f32 %v346_v30, %v342_v34 }
  0x8d   : > { %v334_v24 = vpop.permute.xlu2 %333 }
  0x94   : > { %v310_v20 = vpop.permute.xlu1 %309 }
  0x95   : > { %v308_v21 = vpop.permute.xlu0 %307  ;;  %v377_v45 = vpop.permute.xlu2 %376 }
  0x96   : > { %v379_v50 = vmul.f32 %v377_v45, %v912_v37  ;;  %v380_v51 = vmul.f32 %v377_v45, %v914_v38 }
  0x9c   : > { %v314_v25 = vpop.permute.xlu1 %313 }
  0x9d   : > { %v312_v28 = vpop.permute.xlu0 %311  ;;  %v319_v48 = vsel %vm317_vm1, %v310_v20, %v314_v25  ;;  %v321_v49 = vsel %vm317_vm1, %v314_v25, %v310_v20 }
  0x9e   : > { %v318_v35 = vsel %vm317_vm1, %v308_v21, %v312_v28  ;;  %v320_v36 = vsel %vm317_vm1, %v312_v28, %v308_v21  ;;  %v329_v54 = vmul.f32 %v323_v31, %v321_v49  ;;  %v330_v55 = vmul.f32 %v324_v32, %v319_v48  ;;  %v467_v3 = vpop.permute.xlu2 %466 }
  0x9f   : > { %v916_v39 = vmul.f32 %v323_v31, %v320_v36  ;;  %v918_v40 = vmul.f32 %v324_v32, %v318_v35  ;;  %v469_v22 = vmul.f32 %v467_v3, %v912_v37 }
  0xa4   : > { %v365_v41 = vpop.permute.xlu1 %364 }
  0xa5   : > { %v367_v42 = vmul.f32 %v365_v41, %v872_v8  ;;  %v368_v43 = vmul.f32 %v365_v41, %v881_v10  ;;  %v357_v44 = vpop.permute.xlu0 %356  ;;  %v369_v58 = vmul.f32 %v365_v41, %v870_v7  ;;  %v370_v59 = vmul.f32 %v365_v41, %v879_v9 }
  0xa6   : > { %v359_v46 = vmul.f32 %v357_v44, %v916_v39  ;;  %v360_v47 = vmul.f32 %v357_v44, %v918_v40  ;;  %v361_v60 = vmul.f32 %v357_v44, %v329_v54  ;;  %v362_v61 = vmul.f32 %v357_v44, %v330_v55 }
  0xa8   : > { %v372_v52 = vadd.f32 %v368_v43, %v360_v47  ;;  %v371_v53 = vadd.f32 %v367_v42, %v359_v46  ;;  %v374_v4 = vadd.f32 %v370_v59, %v362_v61  ;;  %v373_v6 = vadd.f32 %v369_v58, %v361_v60 }
  0xaa   : > { %v384_v56 = vadd.f32 %v380_v51, %v372_v52  ;;  %v383_v57 = vadd.f32 %v379_v50, %v371_v53 }
  0xac   : > { %391 = vrot.lane.b32.xlu2 %v384_v56, %s791_s28  ;;  %387 = vrot.lane.b32.xlu1 %v383_v57, %s791_s28  ;;  %v338_v62 = vpop.permute.xlu1 %337 }
  0xad   : > { %v341_v63 = vsel %vm339_vm0, %v334_v24, %v338_v62  ;;  %v343_v0 = vsel %vm339_vm0, %v338_v62, %v334_v24  ;;  %v470_v24 = vmul.f32 %v467_v3, %v914_v38 }
  0xae   : > { %v351_v1 = vmul.f32 %v345_v29, %v341_v63  ;;  %v352_v2 = vmul.f32 %v346_v30, %v343_v0  ;;  %v447_v12 = vpop.permute.xlu0 %446  ;;  %v419_v29 = vpop.permute.xlu2 %418 }
  0xaf   : > { %v449_v15 = vmul.f32 %v447_v12, %v916_v39  ;;  %v450_v16 = vmul.f32 %v447_v12, %v918_v40  ;;  %v451_v18 = vmul.f32 %v447_v12, %v329_v54  ;;  %v452_v34 = vmul.f32 %v447_v12, %v330_v55 }
  0xb0   : > { %v382_v5 = vmul.f32 %v377_v45, %v352_v2  ;;  %v381_v11 = vmul.f32 %v377_v45, %v351_v1  ;;  %v471_v27 = vmul.f32 %v467_v3, %v351_v1  ;;  %v421_v35 = vmul.f32 %v419_v29, %v872_v8 }
  0xb1   : > { %v422_v41 = vmul.f32 %v419_v29, %v881_v10  ;;  %v423_v42 = vmul.f32 %v419_v29, %v870_v7  ;;  %v424_v43 = vmul.f32 %v419_v29, %v879_v9  ;;  %v472_v46 = vmul.f32 %v467_v3, %v352_v2 }
  0xb2   : > { %v386_v13 = vadd.f32 %v382_v5, %v374_v4  ;;  %v385_v14 = vadd.f32 %v381_v11, %v373_v6 }
  0xb4   : > { %v455_v17 = vpop.permute.xlu1 %454  ;;  %393 = vrot.lane.b32.xlu2 %v386_v13, %s791_s28  ;;  %389 = vrot.lane.b32.xlu1 %v385_v14, %s791_s28 }
  0xb5   : > { %v457_v19 = vmul.f32 %v455_v17, %v872_v8  ;;  %v458_v20 = vmul.f32 %v455_v17, %v881_v10  ;;  %v459_v21 = vmul.f32 %v455_v17, %v870_v7  ;;  %v460_v30 = vmul.f32 %v455_v17, %v879_v9 }
  0xb7   : > { %v461_v25 = vadd.f32 %v457_v19, %v449_v15  ;;  %v463_v26 = vadd.f32 %v459_v21, %v451_v18  ;;  %v462_v28 = vadd.f32 %v458_v20, %v450_v16  ;;  %v431_v36 = vpop.permute.xlu0 %430  ;;  %v464_v45 = vadd.f32 %v460_v30, %v452_v34 }
  0xb8   : > { %v433_v8 = vmul.f32 %v431_v36, %v912_v37  ;;  %v434_v51 = vmul.f32 %v431_v36, %v914_v38  ;;  %v435_v52 = vmul.f32 %v431_v36, %v351_v1  ;;  %v436_v53 = vmul.f32 %v431_v36, %v352_v2  ;;  %v698_v37 = vld [vmem:[%s1005_s4 + $0x2] ss:$8 sm:$0x3]  ;;  %v699_v38 = vld [vmem:[%s1005_s4 + $0x3] ss:$8 sm:$0x3] }
  0xb9   : > { %v473_v31 = vadd.f32 %v469_v22, %v461_v25  ;;  %v475_v32 = vadd.f32 %v471_v27, %v463_v26  ;;  %v474_v33 = vadd.f32 %v470_v24, %v462_v28  ;;  %v476_v9 = vadd.f32 %v472_v46, %v464_v45 }
  0xba   : > { %v401_v62 = vperm.slane %v698_v37, 0  ;;  %v402_v63 = vperm.slane %v698_v37, 1  ;;  %v491_v3 = vperm.slane %v699_v38, 0  ;;  %v492_v4 = vperm.slane %v699_v38, 1 }
  0xbb   : > { %477 = vrot.lane.b32.xlu0 %v473_v31, %s792_s29 }
  0xbc   : > { %479 = vrot.lane.b32.xlu2 %v475_v32, %s792_s29  ;;  %481 = vrot.lane.b32.xlu1 %v474_v33, %s792_s29 }
  0xbd   : > { %v411_v44 = vpop.permute.xlu1 %410 }
  0xbe   : > { %v413_v47 = vmul.f32 %v411_v44, %v916_v39  ;;  %v414_v48 = vmul.f32 %v411_v44, %v918_v40  ;;  %v415_v49 = vmul.f32 %v411_v44, %v329_v54  ;;  %v416_v50 = vmul.f32 %v411_v44, %v330_v55 }
  0xc0   : > { %v425_v10 = vadd.f32 %v421_v35, %v413_v47  ;;  %v426_v56 = vadd.f32 %v422_v41, %v414_v48  ;;  %v427_v7 = vadd.f32 %v423_v42, %v415_v49  ;;  %v428_v57 = vadd.f32 %v424_v43, %v416_v50 }
  0xc2   : > { %v437_v58 = vadd.f32 %v433_v8, %v425_v10  ;;  %v438_v59 = vadd.f32 %v434_v51, %v426_v56  ;;  %v439_v60 = vadd.f32 %v435_v52, %v427_v7  ;;  %v440_v61 = vadd.f32 %v436_v53, %v428_v57 }
  0xc3   : > { %483 = vrot.lane.b32.xlu0 %v476_v9, %s792_s29 }
 0x106   : > { %v392_v40 = vpop.permute.xlu2 %391 }
 0x10e   : > { %v394_v55 = vpop.permute.xlu2 %393 }
 0x116   : > { %v480_v21 = vpop.permute.xlu2 %479 }
 0x11e   : > { %v388_v39 = vpop.permute.xlu1 %387 }
 0x11f   : > { %v396_v0 = vsel %vm395_vm2, %v388_v39, %v392_v40  ;;  %v398_v1 = vsel %vm395_vm2, %v392_v40, %v388_v39 }
 0x120   : > { %v405_v6 = vmul.f32 %v401_v62, %v398_v1  ;;  %v406_v11 = vmul.f32 %v402_v63, %v396_v0 }
 0x122   : > { %v441_v18 = vadd.f32 %v437_v58, %v405_v6  ;;  %v442_v19 = vadd.f32 %v438_v59, %v406_v11 }
 0x126   : > { %v390_v54 = vpop.permute.xlu1 %389 }
 0x127   : > { %v399_v14 = vsel %vm395_vm2, %v394_v55, %v390_v54  ;;  %v397_v17 = vsel %vm395_vm2, %v390_v54, %v394_v55  ;;  %v545_v54 = vld [vmem:[%s295_s16] sm:$0xff] }
 0x128   : > { %v407_v20 = vmul.f32 %v401_v62, %v399_v14  ;;  %v408_v22 = vmul.f32 %v402_v63, %v397_v17 }
 0x12a   : > { %v443_v29 = vadd.f32 %v439_v60, %v407_v20  ;;  %v444_v32 = vadd.f32 %v440_v61, %v408_v22  ;;  %v523_v60 = vld [vmem:[%s291_s12] sm:$0xff] }
 0x12d   : > { %v478_v2 = vpop.permute.xlu0 %477 }
 0x12e   : > { %v482_v5 = vpop.permute.xlu1 %481 }
 0x12f   : > { %v486_v12 = vsel %vm485_vm3, %v478_v2, %v482_v5  ;;  %v488_v13 = vsel %vm485_vm3, %v482_v5, %v478_v2 }
 0x130   : > { %v495_v15 = vmul.f32 %v491_v3, %v486_v12  ;;  %v496_v16 = vmul.f32 %v492_v4, %v488_v13 }
 0x132   : > { %v499_v24 = vadd.f32 %v495_v15, %v441_v18  ;;  %v500_v25 = vadd.f32 %v496_v16, %v442_v19 }
 0x134   : > { %v503_v34 = vadd.f32 %v500_v25, %v499_v24 }
 0x135   : > { %v484_v26 = vpop.permute.xlu0 %483 }
 0x136   : > { %v487_v27 = vsel %vm485_vm3, %v480_v21, %v484_v26  ;;  %v489_v28 = vsel %vm485_vm3, %v484_v26, %v480_v21 }
 0x137   : > { %v497_v30 = vmul.f32 %v491_v3, %v487_v27  ;;  %v498_v31 = vmul.f32 %v492_v4, %v489_v28 }
 0x139   : > { %v501_v33 = vadd.f32 %v497_v30, %v443_v29  ;;  %v502_v35 = vadd.f32 %v498_v31, %v444_v32 }
 0x13b   : > { %v504_v36 = vadd.f32 %v503_v34, %v501_v33 }
 0x13d   : > { %v505_v41 = vadd.f32 %v504_v36, %v502_v35 }
 0x13f   : > { %506 = vadd.xlane.f32.xlu1 %v505_v41 }
 0x1b2   : > { %v507_v42 = vpop.xlane.xlu1 %506 }
 0x1b3   : > { %v508_v43 = vmul.f32 0.001953125, %v507_v42 }
 0x1b5   : > { %v509_v44 = vsub.f32 %v499_v24, %v508_v43  ;;  %v510_v45 = vsub.f32 %v500_v25, %v508_v43  ;;  %v511_v46 = vsub.f32 %v501_v33, %v508_v43  ;;  %v512_v47 = vsub.f32 %v502_v35, %v508_v43 }
 0x1b7   : > { %v513_v48 = vmul.f32 %v509_v44, %v509_v44  ;;  %v514_v23 = vmul.f32 %v510_v45, %v510_v45  ;;  %v515_v49 = vmul.f32 %v511_v46, %v511_v46  ;;  %v516_v8 = vmul.f32 %v512_v47, %v512_v47 }
 0x1b9   : > { %v517_v50 = vadd.f32 %v514_v23, %v513_v48 }
 0x1bb   : > { %v518_v51 = vadd.f32 %v517_v50, %v515_v49 }
 0x1bd   : > { %v519_v52 = vadd.f32 %v518_v51, %v516_v8 }
 0x1bf   : > { %520 = vadd.xlane.f32.xlu2 %v519_v52 }
 0x232   : > { %v521_v53 = vpop.xlane.xlu2 %520 }
 0x233   : > { %v522_v10 = vmul.f32 0.001953125, %v521_v53 }
 0x235   : > { %v524_v56 = vadd.f32 1e-05, %v522_v10 }
 0x237   : > { %754 = vrsqrt.f32 %v524_v56  ;;  %vm531_vm5 = vweird.f32 %v524_v56 }
 0x23d   : > { %v755_v7 = vpop.eup %754 }
 0x23e   : > { %v526_v57 = vmul.f32 %v755_v7, %v524_v56  ;;  %vm532_vm4 = vweird.f32 %v755_v7 }
 0x23f   : > { %vm533_vm6 = vmor %vm531_vm5, %vm532_vm4 }
 0x240   : > { %v527_v9 = vmul.f32 %v755_v7, %v526_v57 }
 0x242   : > { %v528_v58 = vmul.f32 0.5, %v527_v9 }
 0x244   : > { %v529_v59 = vsub.f32 1.5, %v528_v58 }
 0x246   : > { %v530_v61 = vmul.f32 %v755_v7, %v529_v59 }
 0x248   : > { %v534_v39 = vsel %vm533_vm6, %v755_v7, %v530_v61 }
 0x249   : > { %v535_v40 = vmul.f32 %v534_v39, %v523_v60 }
 0x24b   : > { %538 = vperm.xlu0 %753, %v535_v40  }
 0x253   : > { %548 = vperm.xlu0 %753, %v545_v54  }
 0x2bd   : > { %v539_v37 = vpop.permute.xlu0 %538 }
 0x2be   : > { %v541_v38 = vmul.f32 %v539_v37, %v509_v44  ;;  %v542_v55 = vmul.f32 %v539_v37, %v510_v45  ;;  %v543_v62 = vmul.f32 %v539_v37, %v511_v46  ;;  %v544_v63 = vmul.f32 %v539_v37, %v512_v47 }
 0x2c5   : > { %v549_v0 = vpop.permute.xlu0 %548 }
 0x2c6   : > { %v551_v1 = vadd.f32 %v549_v0, %v541_v38  ;;  %v552_v2 = vadd.f32 %v549_v0, %v542_v55  ;;  %v553_v3 = vadd.f32 %v549_v0, %v543_v62  ;;  %v554_v4 = vadd.f32 %v549_v0, %v544_v63 }
 0x2c7   : > { %565 = sbr.rel (!%p854_p5) target bundleno = 724 (0x2d4), region = 67 }
 0x2c8   : > { %555 = vst [vmem:[%s283_s17] sm:$0xff] %v551_v1 }
 0x2c9   : > { %556 = vst [vmem:[%s283_s17 + $0x8] sm:$0xff] %v552_v2 }
 0x2ca   : > { %557 = vst [vmem:[%s283_s17 + $0x10] sm:$0xff] %v553_v3 }
 0x2cb   : > { %558 = vst [vmem:[%s283_s17 + $0x18] sm:$0xff] %v554_v4 }
 0x2cf   : > { %v581_v5 = vld [vmem:[%s283_s17] sm:$0xff] }
 0x2d0   : > { %v583_v6 = vld [vmem:[%s283_s17 + $0x8] sm:$0xff]  ;;  %582 = vst [vmem:[%s568_s23] sm:$0xff] %v581_v5 }
 0x2d1   : > { %v585_v11 = vld [vmem:[%s283_s17 + $0x10] sm:$0xff]  ;;  %584 = vst [vmem:[%s568_s23 + $0x8] sm:$0xff] %v583_v6 }
 0x2d2   : > { %v587_v12 = vld [vmem:[%s283_s17 + $0x18] sm:$0xff]  ;;  %586 = vst [vmem:[%s568_s23 + $0x20] sm:$0xff] %v585_v11 }
 0x2d3   : > { %588 = vst [vmem:[%s568_s23 + $0x28] sm:$0xff] %v587_v12 }
 0x2d4 PF: > { %p12_p11 = scmp.ge.s32.totalorder %s842_s22, 4   ;;  %s1008_s18 = smov %s774_s19 }
 0x2d5   : > { %s1009_s19 = smov %s852_s25  ;;  %s1010_s20 = smov %s842_s22 }
 0x2d6   :  { %14 = sbr.rel (!%p12_p11) target bundleno = 2 (0x2), region = 133 }

</bundles_post_ra>
